<compile_context>
chip_gen: v7x
topology: tpu7x:2x2x1
jax: 0.10.0
libtpu: 0.0.40
codegen_flags: <defaults>
</compile_context>

<pallas_src>
import functools

import jax
import jax.numpy as jnp
from jax.experimental import pallas as pl
from jax.experimental.pallas import tpu as pltpu


_LANES = 128
_SUBLANES = 8
_PAD_MULTIPLE = _SUBLANES * _LANES          # flat length rounded up to 1024 elems
_PALLAS_MIN_ELEMS = 64 * 1024               # below this, plain XLA is faster
_DEFAULT_TILE_ROWS = 1024                   # 512 KiB f32 per input tile


def _pad_and_reshape(x):
    """Flatten to (rows, 128) in the native dtype; pad only when required."""
    flat = x.reshape(-1)
    n = flat.shape[0]
    pad = (-n) % _PAD_MULTIPLE
    if pad:
        # Zero padding contributes 0 to the squared-error sum. Only happens
        # when the flat size is not already a multiple of 1024 elements.
        flat = jnp.pad(flat, (0, pad))
    return flat.reshape(-1, _LANES)


def _fused_sse(c_pred, c_tgt, s_pred, s_tgt, tile_rows):
    """Sum of squared differences for two tensor pairs in one pallas_call.

    Returns (sse_content, sse_style) as f32 scalars.
    """
    a_p, a_t = _pad_and_reshape(c_pred), _pad_and_reshape(c_tgt)
    b_p, b_t = _pad_and_reshape(s_pred), _pad_and_reshape(s_tgt)

    rows_a, rows_b = a_p.shape[0], b_p.shape[0]          # multiples of 8
    tb_a = min(tile_rows, rows_a)                         # multiple of 8
    tb_b = min(tile_rows, rows_b)
    blocks_a = -(-rows_a // tb_a)
    blocks_b = -(-rows_b // tb_b)
    num_steps = max(blocks_a, blocks_b)
    # Masking is only needed when the last block overhangs the array rows.
    mask_a = blocks_a * tb_a != rows_a
    mask_b = blocks_b * tb_b != rows_b

    def kernel(ap_ref, at_ref, bp_ref, bt_ref, o_ref, acc_a, acc_b):
        i = pl.program_id(0)

        @pl.when(i == 0)
        def _init():
            acc_a[...] = jnp.zeros_like(acc_a)
            acc_b[...] = jnp.zeros_like(acc_b)

        def folded_sq_diff(p_ref, t_ref, tb, rows, needs_mask):
            d = p_ref[...].astype(jnp.float32) - t_ref[...].astype(jnp.float32)
            dd = d * d
            if needs_mask:
                row = jax.lax.broadcasted_iota(jnp.int32, (tb, _LANES), 0)
                dd = jnp.where(i * tb + row < rows, dd, 0.0)
            # Fold (tb, 128) -> (8, 128) by summing over the major dimension:
            # pure VPU adds, no cross-lane (XLU) work in the steady state.
            return jnp.sum(dd.reshape(tb // _SUBLANES, _SUBLANES, _LANES), axis=0)

        if blocks_a == num_steps:
            acc_a[...] += folded_sq_diff(ap_ref, at_ref, tb_a, rows_a, mask_a)
        else:
            @pl.when(i < blocks_a)
            def _acc_a():
                acc_a[...] += folded_sq_diff(ap_ref, at_ref, tb_a, rows_a, mask_a)

        if blocks_b == num_steps:
            acc_b[...] += folded_sq_diff(bp_ref, bt_ref, tb_b, rows_b, mask_b)
        else:
            @pl.when(i < blocks_b)
            def _acc_b():
                acc_b[...] += folded_sq_diff(bp_ref, bt_ref, tb_b, rows_b, mask_b)

        # Single lane-dense store in the epilogue; cross-lane reduce done in JAX.
        @pl.when(i == num_steps - 1)
        def _finalize():
            o_ref[0, :, :] = acc_a[...]
            o_ref[1, :, :] = acc_b[...]

    def _imap(blocks):
        if blocks == num_steps:
            return lambda i: (i, 0)
        last = blocks - 1
        # Clamp: steps beyond this tensor's block range re-use the last block
        # (no re-DMA since the block index is unchanged) and are masked / skipped.
        return lambda i: (jnp.minimum(i, last), 0)

    imap_a = _imap(blocks_a)
    imap_b = _imap(blocks_b)

    out = pl.pallas_call(
        kernel,
        out_shape=jax.ShapeDtypeStruct((2, _SUBLANES, _LANES), jnp.float32),
        grid_spec=pltpu.PrefetchScalarGridSpec(
            num_scalar_prefetch=0,
            grid=(num_steps,),
            in_specs=[
                pl.BlockSpec((tb_a, _LANES), imap_a),
                pl.BlockSpec((tb_a, _LANES), imap_a),
                pl.BlockSpec((tb_b, _LANES), imap_b),
                pl.BlockSpec((tb_b, _LANES), imap_b),
            ],
            out_specs=pl.BlockSpec((2, _SUBLANES, _LANES), lambda i: (0, 0, 0)),
            scratch_shapes=[
                pltpu.VMEM((_SUBLANES, _LANES), jnp.float32),
                pltpu.VMEM((_SUBLANES, _LANES), jnp.float32),
            ],
        ),
        compiler_params=pltpu.CompilerParams(
            dimension_semantics=("arbitrary",),  # reduction axis
        ),
    )(a_p, a_t, b_p, b_t)

    return jnp.sum(out[0]), jnp.sum(out[1])


@functools.partial(jax.jit, static_argnames=("tile_rows",))
def _style_loss(c_pred, c_tgt, s_pred, s_tgt, content_weight, style_weight,
                tile_rows=_DEFAULT_TILE_ROWS):
    n_c = c_pred.size
    n_s = s_pred.size
    if max(n_c, n_s) < _PALLAS_MIN_ELEMS:
        # Tiny tensors: a Pallas launch is pure overhead; plain XLA wins.
        mse_c = jnp.mean(jnp.square(c_pred.astype(jnp.float32) -
                                    c_tgt.astype(jnp.float32)))
        mse_s = jnp.mean(jnp.square(s_pred.astype(jnp.float32) -
                                    s_tgt.astype(jnp.float32)))
    else:
        sse_c, sse_s = _fused_sse(c_pred, c_tgt, s_pred, s_tgt, tile_rows)
        mse_c = sse_c / jnp.float32(n_c)
        mse_s = sse_s / jnp.float32(n_s)
    return content_weight * mse_c + style_weight * mse_s


class StyleLossPallas:
    """JAX/Pallas equivalent of the PyTorch StyleLoss module."""

    def __init__(self, target, style_weight, content_weight):
        # `target` is a pair: (reference content features, reference style features)
        self.target = target
        self.style_weight = style_weight
        self.content_weight = content_weight

    def __call__(self, target):
        return _style_loss(
            target[0], self.target[0],
            target[1], self.target[1],
            jnp.float32(self.content_weight), jnp.float32(self.style_weight),
        )


if __name__ == "__main__":
    key = jax.random.PRNGKey(0)
    keys = jax.random.split(key, 8)

    style_weight = 1e3
    content_weight = 1.0

    # Case 1: content features big enough for the Pallas path; tiny style gram
    # rides along in the same fused launch.
    content_ref = jax.random.normal(keys[0], (2, 16, 64, 64), dtype=jnp.float32)
    style_ref = jax.random.normal(keys[1], (2, 16, 16), dtype=jnp.float32)
    content_pred = jax.random.normal(keys[2], (2, 16, 64, 64), dtype=jnp.float32)
    style_pred = jax.random.normal(keys[3], (2, 16, 16), dtype=jnp.float32)

    loss_mod = StyleLossPallas((content_ref, style_ref), style_weight, content_weight)
    total = jax.block_until_ready(loss_mod((content_pred, style_pred)))
    ref = (content_weight * jnp.mean((content_pred - content_ref) ** 2)
           + style_weight * jnp.mean((style_pred - style_ref) ** 2))
    assert jnp.allclose(total, ref, rtol=1e-4, atol=1e-5), (total, ref)

    # Case 2: sizes not divisible by 128 -> exercises tail masking, clamped
    # block index_maps and a multi-step grid.
    c2_ref = jax.random.normal(keys[4], (3, 5, 100, 100), dtype=jnp.float32)
    s2_ref = jax.random.normal(keys[5], (3, 7, 7), dtype=jnp.float32)
    c2_pred = jax.random.normal(keys[6], (3, 5, 100, 100), dtype=jnp.float32)
    s2_pred = jax.random.normal(keys[7], (3, 7, 7), dtype=jnp.float32)
    loss_mod2 = StyleLossPallas((c2_ref, s2_ref), 5.0, 2.0)
    total2 = jax.block_until_ready(loss_mod2((c2_pred, s2_pred)))
    ref2 = (2.0 * jnp.mean((c2_pred - c2_ref) ** 2)
            + 5.0 * jnp.mean((s2_pred - s2_ref) ** 2))
    assert jnp.allclose(total2, ref2, rtol=1e-4, atol=1e-5), (total2, ref2)

    # Case 3: bf16 inputs stay bf16 in HBM (no wrapper-side f32 cast).
    c3_ref, c3_pred = content_ref.astype(jnp.bfloat16), content_pred.astype(jnp.bfloat16)
    s3_ref, s3_pred = style_ref.astype(jnp.bfloat16), style_pred.astype(jnp.bfloat16)
    loss_mod3 = StyleLossPallas((c3_ref, s3_ref), style_weight, content_weight)
    total3 = jax.block_until_ready(loss_mod3((c3_pred, s3_pred)))
    ref3 = (content_weight * jnp.mean(
                (c3_pred.astype(jnp.float32) - c3_ref.astype(jnp.float32)) ** 2)
            + style_weight * jnp.mean(
                (s3_pred.astype(jnp.float32) - s3_ref.astype(jnp.float32)) ** 2))
    assert jnp.allclose(total3, ref3, rtol=1e-3, atol=1e-5), (total3, ref3)

    # Case 4: tiny tensors take the plain-XLA fallback (no Pallas launch).
    tiny_ref = jax.random.normal(keys[0], (2, 4, 16, 16), dtype=jnp.float32)
    tiny_pred = jax.random.normal(keys[1], (2, 4, 16, 16), dtype=jnp.float32)
    gram_ref = jax.random.normal(keys[2], (2, 4, 4), dtype=jnp.float32)
    gram_pred = jax.random.normal(keys[3], (2, 4, 4), dtype=jnp.float32)
    loss_mod4 = StyleLossPallas((tiny_ref, gram_ref), 1e3, 1.0)
    total4 = jax.block_until_ready(loss_mod4((tiny_pred, gram_pred)))
    ref4 = (1.0 * jnp.mean((tiny_pred - tiny_ref) ** 2)
            + 1e3 * jnp.mean((gram_pred - gram_ref) ** 2))
    assert jnp.allclose(total4, ref4, rtol=1e-4, atol=1e-5), (total4, ref4)

    print("KERNEL_OK")
</pallas_src>

<mosaic_0001>
module attributes {stable_mosaic.version = 11 : i64} {
  func.func @kernel(%arg0: i32, %arg1: memref<1024x128xf32, #tpu.memory_space<vmem>>, %arg2: memref<1024x128xf32, #tpu.memory_space<vmem>>, %arg3: memref<8x128xf32, #tpu.memory_space<vmem>>, %arg4: memref<8x128xf32, #tpu.memory_space<vmem>>, %arg5: memref<2x8x128xf32, #tpu.memory_space<vmem>>, %arg6: memref<8x128xf32, #tpu.memory_space<vmem>>, %arg7: memref<8x128xf32, #tpu.memory_space<vmem>>) attributes {dimension_semantics = [#tpu.dimension_semantics<arbitrary>], iteration_bounds = array<i64: 1>, scalar_prefetch = 0 : i64, scratch_operands = 2 : i64, tpu.core_type = #tpu.core_type<tc>, window_params = [{transform_indices = @transform_0, window_bounds = array<i64: 1024, 128>}, {transform_indices = @transform_1, window_bounds = array<i64: 1024, 128>}, {transform_indices = @transform_2, window_bounds = array<i64: 8, 128>}, {transform_indices = @transform_3, window_bounds = array<i64: 8, 128>}, {pipeline_mode = #tpu.pipeline_mode<synchronous>, transform_indices = @transform_4, window_bounds = array<i64: 2, 8, 128>}]} {
    %c0_i32 = arith.constant 0 : i32
    %0 = arith.cmpi eq, %arg0, %c0_i32 : i32
    %1 = arith.extui %0 : i1 to i32
    %c0_i32_0 = arith.constant 0 : i32
    %2 = arith.cmpi ne, %1, %c0_i32_0 : i32
    scf.if %2 {
      %cst_19 = arith.constant 0.000000e+00 : f32
      %24 = vector.broadcast %cst_19 : f32 to vector<8x128xf32>
      %c0_20 = arith.constant 0 : index
      %c0_21 = arith.constant 0 : index
      %25 = vector.load %arg6[%c0_20, %c0_21] : memref<8x128xf32, #tpu.memory_space<vmem>>, vector<8x128xf32>
      tpu.vector_store %arg6[%c0_20, %c0_21], %24 {strides = array<i32>} : memref<8x128xf32, #tpu.memory_space<vmem>>, vector<8x128xf32>,
      %cst_22 = arith.constant 0.000000e+00 : f32
      %26 = vector.broadcast %cst_22 : f32 to vector<8x128xf32>
      %c0_23 = arith.constant 0 : index
      %c0_24 = arith.constant 0 : index
      %27 = vector.load %arg7[%c0_23, %c0_24] : memref<8x128xf32, #tpu.memory_space<vmem>>, vector<8x128xf32>
      tpu.vector_store %arg7[%c0_23, %c0_24], %26 {strides = array<i32>} : memref<8x128xf32, #tpu.memory_space<vmem>>, vector<8x128xf32>,
    } else {
    }
    %c0 = arith.constant 0 : index
    %c0_1 = arith.constant 0 : index
    %3 = vector.load %arg6[%c0, %c0_1] : memref<8x128xf32, #tpu.memory_space<vmem>>, vector<8x128xf32>
    %c0_2 = arith.constant 0 : index
    %c0_3 = arith.constant 0 : index
    %4 = vector.load %arg1[%c0_2, %c0_3] : memref<1024x128xf32, #tpu.memory_space<vmem>>, vector<1024x128xf32>
    %c0_4 = arith.constant 0 : index
    %c0_5 = arith.constant 0 : index
    %5 = vector.load %arg2[%c0_4, %c0_5] : memref<1024x128xf32, #tpu.memory_space<vmem>>, vector<1024x128xf32>
    %6 = arith.subf %4, %5 : vector<1024x128xf32>
    %7 = arith.mulf %6, %6 : vector<1024x128xf32>
    %8 = vector.shape_cast %7 : vector<1024x128xf32> to vector<128x8x128xf32>
    %cst = arith.constant dense<0.000000e+00> : vector<8x128xf32>
    %9 = vector.multi_reduction <add>, %8, %cst [0] : vector<128x8x128xf32> to vector<8x128xf32>
    %10 = arith.addf %3, %9 : vector<8x128xf32>
    %c0_6 = arith.constant 0 : index
    %c0_7 = arith.constant 0 : index
    %11 = vector.load %arg6[%c0_6, %c0_7] : memref<8x128xf32, #tpu.memory_space<vmem>>, vector<8x128xf32>
    tpu.vector_store %arg6[%c0_6, %c0_7], %10 {strides = array<i32>} : memref<8x128xf32, #tpu.memory_space<vmem>>, vector<8x128xf32>,
    %c0_8 = arith.constant 0 : index
    %c0_9 = arith.constant 0 : index
    %12 = vector.load %arg7[%c0_8, %c0_9] : memref<8x128xf32, #tpu.memory_space<vmem>>, vector<8x128xf32>
    %c0_10 = arith.constant 0 : index
    %c0_11 = arith.constant 0 : index
    %13 = vector.load %arg3[%c0_10, %c0_11] : memref<8x128xf32, #tpu.memory_space<vmem>>, vector<8x128xf32>
    %c0_12 = arith.constant 0 : index
    %c0_13 = arith.constant 0 : index
    %14 = vector.load %arg4[%c0_12, %c0_13] : memref<8x128xf32, #tpu.memory_space<vmem>>, vector<8x128xf32>
    %15 = arith.subf %13, %14 : vector<8x128xf32>
    %16 = arith.mulf %15, %15 : vector<8x128xf32>
    %17 = vector.shape_cast %16 : vector<8x128xf32> to vector<1x8x128xf32>
    %cst_14 = arith.constant dense<0.000000e+00> : vector<8x128xf32>
    %18 = vector.multi_reduction <add>, %17, %cst_14 [0] : vector<1x8x128xf32> to vector<8x128xf32>
    %19 = arith.addf %12, %18 : vector<8x128xf32>
    %c0_15 = arith.constant 0 : index
    %c0_16 = arith.constant 0 : index
    %20 = vector.load %arg7[%c0_15, %c0_16] : memref<8x128xf32, #tpu.memory_space<vmem>>, vector<8x128xf32>
    tpu.vector_store %arg7[%c0_15, %c0_16], %19 {strides = array<i32>} : memref<8x128xf32, #tpu.memory_space<vmem>>, vector<8x128xf32>,
    %c0_i32_17 = arith.constant 0 : i32
    %21 = arith.cmpi eq, %arg0, %c0_i32_17 : i32
    %22 = arith.extui %21 : i1 to i32
    %c0_i32_18 = arith.constant 0 : i32
    %23 = arith.cmpi ne, %22, %c0_i32_18 : i32
    scf.if %23 {
      %c0_19 = arith.constant 0 : index
      %c0_20 = arith.constant 0 : index
      %24 = vector.load %arg6[%c0_19, %c0_20] : memref<8x128xf32, #tpu.memory_space<vmem>>, vector<8x128xf32>
      %c0_21 = arith.constant 0 : index
      %c0_22 = arith.constant 0 : index
      %c0_23 = arith.constant 0 : index
      %25 = vector.load %arg5[%c0_21, %c0_22, %c0_23] : memref<2x8x128xf32, #tpu.memory_space<vmem>>, vector<1x8x128xf32>
      %26 = vector.shape_cast %25 : vector<1x8x128xf32> to vector<8x128xf32>
      %27 = vector.shape_cast %24 : vector<8x128xf32> to vector<1x8x128xf32>
      tpu.vector_store %arg5[%c0_21, %c0_22, %c0_23], %27 {strides = array<i32>} : memref<2x8x128xf32, #tpu.memory_space<vmem>>, vector<1x8x128xf32>,
      %c0_24 = arith.constant 0 : index
      %c0_25 = arith.constant 0 : index
      %28 = vector.load %arg7[%c0_24, %c0_25] : memref<8x128xf32, #tpu.memory_space<vmem>>, vector<8x128xf32>
      %c1 = arith.constant 1 : index
      %c0_26 = arith.constant 0 : index
      %c0_27 = arith.constant 0 : index
      %29 = vector.load %arg5[%c1, %c0_26, %c0_27] : memref<2x8x128xf32, #tpu.memory_space<vmem>>, vector<1x8x128xf32>
      %30 = vector.shape_cast %29 : vector<1x8x128xf32> to vector<8x128xf32>
      %31 = vector.shape_cast %28 : vector<8x128xf32> to vector<1x8x128xf32>
      tpu.vector_store %arg5[%c1, %c0_26, %c0_27], %31 {strides = array<i32>} : memref<2x8x128xf32, #tpu.memory_space<vmem>>, vector<1x8x128xf32>,
    } else {
    }
    return
  }
  func.func @transform_0(%arg0: i32) -> (i32, i32) {
    %c0_i32 = arith.constant 0 : i32
    %c0_i32_0 = arith.constant 0 : i32
    return %arg0, %c0_i32 : i32, i32
  }
  func.func @transform_1(%arg0: i32) -> (i32, i32) {
    %c0_i32 = arith.constant 0 : i32
    %c0_i32_0 = arith.constant 0 : i32
    return %arg0, %c0_i32 : i32, i32
  }
  func.func @transform_2(%arg0: i32) -> (i32, i32) {
    %c0_i32 = arith.constant 0 : i32
    %c0_i32_0 = arith.constant 0 : i32
    return %arg0, %c0_i32 : i32, i32
  }
  func.func @transform_3(%arg0: i32) -> (i32, i32) {
    %c0_i32 = arith.constant 0 : i32
    %c0_i32_0 = arith.constant 0 : i32
    return %arg0, %c0_i32 : i32, i32
  }
  func.func @transform_4(%arg0: i32) -> (i32, i32, i32) {
    %c0_i32 = arith.constant 0 : i32
    %c0_i32_0 = arith.constant 0 : i32
    %c0_i32_1 = arith.constant 0 : i32
    %c0_i32_2 = arith.constant 0 : i32
    return %c0_i32, %c0_i32_0, %c0_i32_1 : i32, i32, i32
  }
}

</mosaic_0001>

<bundles_post_ra>
// kernel: _style_loss.1
= control target key start
LH: loop header
LB: loop body
LE: loop exit
PB: predicated region body
PF: predicated region fallthrough
CT: control target
= control target key end

     0   :  { %s1871_s0 = inlined_call_operand.vmem [shape: f32[1024,128], index: 0, kind: input, shape index: {}]   ;;  %s1872_s1 = inlined_call_operand.vmem [shape: f32[1024,128], index: 1, kind: input, shape index: {}]   ;;  %s1873_s2 = inlined_call_operand.vmem [shape: f32[8,128], index: 2, kind: input, shape index: {}]   ;;  %s1874_s3 = inlined_call_operand.vmem [shape: f32[8,128], index: 3, kind: input, shape index: {}]   ;;  %s1875_s4 = inlined_call_operand.vmem [shape: f32[2,8,128], index: 4, kind: output, shape index: {}]  }
   0x1   :  { %v57_v0 = vld [vmem:[%s1871_s0 + $0x108] sm:$0xff]  ;;  %v58_v1 = vld [vmem:[%s1871_s0 + $0x110] sm:$0xff]  ;;  %v59_v2 = vld [vmem:[%s1871_s0 + $0x118] sm:$0xff] }
   0x2   :  { %v60_v3 = vld [vmem:[%s1871_s0 + $0x120] sm:$0xff]  ;;  %v61_v4 = vld [vmem:[%s1871_s0 + $0x128] sm:$0xff]  ;;  %v62_v5 = vld [vmem:[%s1871_s0 + $0x130] sm:$0xff] }
   0x3   :  { %v63_v6 = vld [vmem:[%s1871_s0 + $0x138] sm:$0xff]  ;;  %v64_v7 = vld [vmem:[%s1871_s0 + $0x140] sm:$0xff]  ;;  %v65_v8 = vld [vmem:[%s1871_s0 + $0x148] sm:$0xff] }
   0x4   :  { %v66_v9 = vld [vmem:[%s1871_s0 + $0x150] sm:$0xff]  ;;  %v67_v10 = vld [vmem:[%s1871_s0 + $0x158] sm:$0xff]  ;;  %v68_v11 = vld [vmem:[%s1871_s0 + $0x160] sm:$0xff] }
   0x5   :  { %v69_v12 = vld [vmem:[%s1871_s0 + $0x168] sm:$0xff]  ;;  %v70_v14 = vld [vmem:[%s1871_s0 + $0x170] sm:$0xff]  ;;  %v71_v15 = vld [vmem:[%s1871_s0 + $0x178] sm:$0xff] }
   0x6   :  { %v185_v13 = vld [vmem:[%s1872_s1 + $0x108] sm:$0xff]  ;;  %v72_v16 = vld [vmem:[%s1871_s0 + $0x180] sm:$0xff]  ;;  %v186_v17 = vld [vmem:[%s1872_s1 + $0x110] sm:$0xff] }
   0x7   :  { %v187_v18 = vld [vmem:[%s1872_s1 + $0x118] sm:$0xff]  ;;  %v188_v19 = vld [vmem:[%s1872_s1 + $0x120] sm:$0xff]  ;;  %v771_v20 = vsub.f32 %v57_v0, %v185_v13  ;;  %v73_v21 = vld [vmem:[%s1871_s0 + $0x188] sm:$0xff]  ;;  %v791_v27 = vsub.f32 %v58_v1, %v186_v17 }
   0x8   :  { %v74_v22 = vld [vmem:[%s1871_s0 + $0x190] sm:$0xff]  ;;  %v75_v23 = vld [vmem:[%s1871_s0 + $0x198] sm:$0xff]  ;;  %v189_v24 = vld [vmem:[%s1872_s1 + $0x128] sm:$0xff]  ;;  %v793_v28 = vsub.f32 %v59_v2, %v187_v18  ;;  %v795_v29 = vsub.f32 %v60_v3, %v188_v19 }
   0x9   :  { %v190_v25 = vld [vmem:[%s1872_s1 + $0x130] sm:$0xff]  ;;  %v191_v26 = vld [vmem:[%s1872_s1 + $0x138] sm:$0xff]  ;;  %v76_v30 = vld [vmem:[%s1871_s0 + $0x1a0] sm:$0xff]  ;;  %v815_v36 = vsub.f32 %v61_v4, %v189_v24 }
   0xa   :  { %v77_v31 = vld [vmem:[%s1871_s0 + $0x1a8] sm:$0xff]  ;;  %v78_v32 = vld [vmem:[%s1871_s0 + $0x1b0] sm:$0xff]  ;;  %v192_v33 = vld [vmem:[%s1872_s1 + $0x140] sm:$0xff]  ;;  %v817_v37 = vsub.f32 %v62_v5, %v190_v25  ;;  %v819_v38 = vsub.f32 %v63_v6, %v191_v26 }
   0xb   :  { %v193_v34 = vld [vmem:[%s1872_s1 + $0x148] sm:$0xff]  ;;  %v194_v35 = vld [vmem:[%s1872_s1 + $0x150] sm:$0xff]  ;;  %v79_v39 = vld [vmem:[%s1871_s0 + $0x1b8] sm:$0xff]  ;;  %v839_v45 = vsub.f32 %v64_v7, %v192_v33 }
   0xc   :  { %v80_v40 = vld [vmem:[%s1871_s0 + $0x1c0] sm:$0xff]  ;;  %v81_v41 = vld [vmem:[%s1871_s0 + $0x1c8] sm:$0xff]  ;;  %v195_v42 = vld [vmem:[%s1872_s1 + $0x158] sm:$0xff]  ;;  %v841_v46 = vsub.f32 %v65_v8, %v193_v34  ;;  %v843_v47 = vsub.f32 %v66_v9, %v194_v35 }
   0xd   :  { %v196_v43 = vld [vmem:[%s1872_s1 + $0x160] sm:$0xff]  ;;  %v197_v44 = vld [vmem:[%s1872_s1 + $0x168] sm:$0xff]  ;;  %v82_v48 = vld [vmem:[%s1871_s0 + $0x1d0] sm:$0xff]  ;;  %v863_v54 = vsub.f32 %v67_v10, %v195_v42 }
   0xe   :  { %v83_v49 = vld [vmem:[%s1871_s0 + $0x1d8] sm:$0xff]  ;;  %v84_v50 = vld [vmem:[%s1871_s0 + $0x1e0] sm:$0xff]  ;;  %v198_v51 = vld [vmem:[%s1872_s1 + $0x170] sm:$0xff]  ;;  %v865_v55 = vsub.f32 %v68_v11, %v196_v43  ;;  %v867_v56 = vsub.f32 %v69_v12, %v197_v44 }
   0xf   :  { %v199_v52 = vld [vmem:[%s1872_s1 + $0x178] sm:$0xff]  ;;  %v200_v53 = vld [vmem:[%s1872_s1 + $0x180] sm:$0xff]  ;;  %v85_v57 = vld [vmem:[%s1871_s0 + $0x1e8] sm:$0xff]  ;;  %v887_v63 = vsub.f32 %v70_v14, %v198_v51 }
  0x10   :  { %v86_v58 = vld [vmem:[%s1871_s0 + $0x1f0] sm:$0xff]  ;;  %v87_v59 = vld [vmem:[%s1871_s0 + $0x1f8] sm:$0xff]  ;;  %v201_v60 = vld [vmem:[%s1872_s1 + $0x188] sm:$0xff]  ;;  %v889_v0 = vsub.f32 %v71_v15, %v199_v52  ;;  %v891_v1 = vsub.f32 %v72_v16, %v200_v53 }
  0x11   :  { %v202_v61 = vld [vmem:[%s1872_s1 + $0x190] sm:$0xff]  ;;  %v203_v62 = vld [vmem:[%s1872_s1 + $0x198] sm:$0xff]  ;;  %v88_v2 = vld [vmem:[%s1871_s0 + $0x200] sm:$0xff]  ;;  %v911_v8 = vsub.f32 %v73_v21, %v201_v60 }
  0x12   :  { %v89_v3 = vld [vmem:[%s1871_s0 + $0x208] sm:$0xff]  ;;  %v90_v4 = vld [vmem:[%s1871_s0 + $0x210] sm:$0xff]  ;;  %v204_v5 = vld [vmem:[%s1872_s1 + $0x1a0] sm:$0xff]  ;;  %v913_v9 = vsub.f32 %v74_v22, %v202_v61  ;;  %v915_v10 = vsub.f32 %v75_v23, %v203_v62 }
  0x13   :  { %v205_v6 = vld [vmem:[%s1872_s1 + $0x1a8] sm:$0xff]  ;;  %v206_v7 = vld [vmem:[%s1872_s1 + $0x1b0] sm:$0xff]  ;;  %v91_v11 = vld [vmem:[%s1871_s0 + $0x218] sm:$0xff]  ;;  %v935_v17 = vsub.f32 %v76_v30, %v204_v5 }
  0x14   :  { %v92_v12 = vld [vmem:[%s1871_s0 + $0x220] sm:$0xff]  ;;  %v93_v13 = vld [vmem:[%s1871_s0 + $0x228] sm:$0xff]  ;;  %v207_v14 = vld [vmem:[%s1872_s1 + $0x1b8] sm:$0xff]  ;;  %v937_v18 = vsub.f32 %v77_v31, %v205_v6  ;;  %v939_v19 = vsub.f32 %v78_v32, %v206_v7 }
  0x15   :  { %v208_v15 = vld [vmem:[%s1872_s1 + $0x1c0] sm:$0xff]  ;;  %v209_v16 = vld [vmem:[%s1872_s1 + $0x1c8] sm:$0xff]  ;;  %v94_v21 = vld [vmem:[%s1871_s0 + $0x230] sm:$0xff]  ;;  %v959_v30 = vsub.f32 %v79_v39, %v207_v14 }
  0x16   :  { %v95_v22 = vld [vmem:[%s1871_s0 + $0x238] sm:$0xff]  ;;  %v96_v23 = vld [vmem:[%s1871_s0 + $0x240] sm:$0xff]  ;;  %v210_v24 = vld [vmem:[%s1872_s1 + $0x1d0] sm:$0xff]  ;;  %v961_v31 = vsub.f32 %v80_v40, %v208_v15  ;;  %v963_v32 = vsub.f32 %v81_v41, %v209_v16 }
  0x17   :  { %v211_v25 = vld [vmem:[%s1872_s1 + $0x1d8] sm:$0xff]  ;;  %v212_v26 = vld [vmem:[%s1872_s1 + $0x1e0] sm:$0xff]  ;;  %v97_v33 = vld [vmem:[%s1871_s0 + $0x248] sm:$0xff]  ;;  %v983_v42 = vsub.f32 %v82_v48, %v210_v24 }
  0x18   :  { %v98_v34 = vld [vmem:[%s1871_s0 + $0x250] sm:$0xff]  ;;  %v99_v35 = vld [vmem:[%s1871_s0 + $0x258] sm:$0xff]  ;;  %v213_v39 = vld [vmem:[%s1872_s1 + $0x1e8] sm:$0xff]  ;;  %v985_v43 = vsub.f32 %v83_v49, %v211_v25  ;;  %v987_v44 = vsub.f32 %v84_v50, %v212_v26 }
  0x19   :  { %v214_v40 = vld [vmem:[%s1872_s1 + $0x1f0] sm:$0xff]  ;;  %v215_v41 = vld [vmem:[%s1872_s1 + $0x1f8] sm:$0xff]  ;;  %v100_v51 = vld [vmem:[%s1871_s0 + $0x260] sm:$0xff]  ;;  %v1007_v60 = vsub.f32 %v85_v57, %v213_v39 }
  0x1a   :  { %v101_v52 = vld [vmem:[%s1871_s0 + $0x268] sm:$0xff]  ;;  %v102_v53 = vld [vmem:[%s1871_s0 + $0x270] sm:$0xff]  ;;  %v216_v48 = vld [vmem:[%s1872_s1 + $0x200] sm:$0xff]  ;;  %v1009_v61 = vsub.f32 %v86_v58, %v214_v40  ;;  %v1011_v62 = vsub.f32 %v87_v59, %v215_v41 }
  0x1b   :  { %v217_v49 = vld [vmem:[%s1872_s1 + $0x208] sm:$0xff]  ;;  %v218_v50 = vld [vmem:[%s1872_s1 + $0x210] sm:$0xff]  ;;  %v103_v5 = vld [vmem:[%s1871_s0 + $0x278] sm:$0xff]  ;;  %v1031_v14 = vsub.f32 %v88_v2, %v216_v48 }
  0x1c   :  { %v104_v6 = vld [vmem:[%s1871_s0 + $0x280] sm:$0xff]  ;;  %v105_v7 = vld [vmem:[%s1871_s0 + $0x288] sm:$0xff]  ;;  %v219_v57 = vld [vmem:[%s1872_s1 + $0x218] sm:$0xff]  ;;  %v1033_v15 = vsub.f32 %v89_v3, %v217_v49  ;;  %v1035_v16 = vsub.f32 %v90_v4, %v218_v50 }
  0x1d   :  { %v220_v58 = vld [vmem:[%s1872_s1 + $0x220] sm:$0xff]  ;;  %v221_v59 = vld [vmem:[%s1872_s1 + $0x228] sm:$0xff]  ;;  %v106_v24 = vld [vmem:[%s1871_s0 + $0x290] sm:$0xff]  ;;  %v1055_v39 = vsub.f32 %v91_v11, %v219_v57 }
  0x1e   :  { %v107_v25 = vld [vmem:[%s1871_s0 + $0x298] sm:$0xff]  ;;  %v108_v26 = vld [vmem:[%s1871_s0 + $0x2a0] sm:$0xff]  ;;  %v222_v2 = vld [vmem:[%s1872_s1 + $0x230] sm:$0xff]  ;;  %v1057_v40 = vsub.f32 %v92_v12, %v220_v58  ;;  %v1059_v41 = vsub.f32 %v93_v13, %v221_v59 }
  0x1f   :  { %v223_v3 = vld [vmem:[%s1872_s1 + $0x238] sm:$0xff]  ;;  %v224_v4 = vld [vmem:[%s1872_s1 + $0x240] sm:$0xff]  ;;  %1876 = vst [vmem:[#allocation4_spill] sm:$0xff] %v1055_v39  ;;  %v109_v48 = vld [vmem:[%s1871_s0 + $0x2a8] sm:$0xff]  ;;  %v1079_v57 = vsub.f32 %v94_v21, %v222_v2 }
  0x20   :  { %1877 = vst [vmem:[#allocation5_spill] sm:$0xff] %v1057_v40  ;;  %1878 = vst [vmem:[#allocation6_spill] sm:$0xff] %v1059_v41  ;;  %v110_v49 = vld [vmem:[%s1871_s0 + $0x2b0] sm:$0xff]  ;;  %v111_v50 = vld [vmem:[%s1871_s0 + $0x2b8] sm:$0xff]  ;;  %v1081_v58 = vsub.f32 %v95_v22, %v223_v3  ;;  %v1083_v59 = vsub.f32 %v96_v23, %v224_v4 }
  0x21   :  { %v225_v11 = vld [vmem:[%s1872_s1 + $0x248] sm:$0xff]  ;;  %v226_v12 = vld [vmem:[%s1872_s1 + $0x250] sm:$0xff]  ;;  %v227_v13 = vld [vmem:[%s1872_s1 + $0x258] sm:$0xff]  ;;  %1879 = vst [vmem:[#allocation7_spill] sm:$0xff] %v1079_v57 }
  0x22   :  { %1880 = vst [vmem:[#allocation8_spill] sm:$0xff] %v1081_v58  ;;  %1881 = vst [vmem:[#allocation9_spill] sm:$0xff] %v1083_v59  ;;  %v112_v41 = vld [vmem:[%s1871_s0 + $0x2c0] sm:$0xff]  ;;  %v113_v40 = vld [vmem:[%s1871_s0 + $0x2c8] sm:$0xff]  ;;  %v1103_v2 = vsub.f32 %v97_v33, %v225_v11  ;;  %v1105_v3 = vsub.f32 %v98_v34, %v226_v12  ;;  %v1107_v4 = vsub.f32 %v99_v35, %v227_v13 }
  0x23   :  { %v114_v39 = vld [vmem:[%s1871_s0 + $0x2d0] sm:$0xff]  ;;  %v228_v21 = vld [vmem:[%s1872_s1 + $0x260] sm:$0xff]  ;;  %v229_v22 = vld [vmem:[%s1872_s1 + $0x268] sm:$0xff] }
  0x24   :  { %v230_v23 = vld [vmem:[%s1872_s1 + $0x270] sm:$0xff]  ;;  %1882 = vst [vmem:[#allocation10_spill] sm:$0xff] %v1103_v2  ;;  %1883 = vst [vmem:[#allocation11_spill] sm:$0xff] %v1105_v3  ;;  %v115_v59 = vld [vmem:[%s1871_s0 + $0x2d8] sm:$0xff]  ;;  %v1127_v11 = vsub.f32 %v100_v51, %v228_v21  ;;  %v1129_v12 = vsub.f32 %v101_v52, %v229_v22 }
  0x25   :  { %1884 = vst [vmem:[#allocation12_spill] sm:$0xff] %v1107_v4  ;;  %v116_v58 = vld [vmem:[%s1871_s0 + $0x2e0] sm:$0xff]  ;;  %v117_v57 = vld [vmem:[%s1871_s0 + $0x2e8] sm:$0xff]  ;;  %v231_v33 = vld [vmem:[%s1872_s1 + $0x278] sm:$0xff]  ;;  %v1131_v13 = vsub.f32 %v102_v53, %v230_v23 }
  0x26   :  { %v232_v34 = vld [vmem:[%s1872_s1 + $0x280] sm:$0xff]  ;;  %v233_v35 = vld [vmem:[%s1872_s1 + $0x288] sm:$0xff]  ;;  %1885 = vst [vmem:[#allocation13_spill] sm:$0xff] %v1127_v11  ;;  %1886 = vst [vmem:[#allocation14_spill] sm:$0xff] %v1129_v12  ;;  %v1151_v21 = vsub.f32 %v103_v5, %v231_v33 }
  0x27   :  { %1887 = vst [vmem:[#allocation15_spill] sm:$0xff] %v1131_v13  ;;  %v118_v4 = vld [vmem:[%s1871_s0 + $0x2f0] sm:$0xff]  ;;  %v119_v3 = vld [vmem:[%s1871_s0 + $0x2f8] sm:$0xff]  ;;  %v120_v2 = vld [vmem:[%s1871_s0 + $0x300] sm:$0xff]  ;;  %v1153_v22 = vsub.f32 %v104_v6, %v232_v34  ;;  %v1155_v23 = vsub.f32 %v105_v7, %v233_v35 }
  0x28   :  { %v234_v51 = vld [vmem:[%s1872_s1 + $0x290] sm:$0xff]  ;;  %v235_v52 = vld [vmem:[%s1872_s1 + $0x298] sm:$0xff]  ;;  %v236_v53 = vld [vmem:[%s1872_s1 + $0x2a0] sm:$0xff]  ;;  %1888 = vst [vmem:[#allocation16_spill] sm:$0xff] %v1151_v21 }
  0x29   :  { %1889 = vst [vmem:[#allocation17_spill] sm:$0xff] %v1153_v22  ;;  %1890 = vst [vmem:[#allocation18_spill] sm:$0xff] %v1155_v23  ;;  %v121_v13 = vld [vmem:[%s1871_s0 + $0x308] sm:$0xff]  ;;  %v122_v12 = vld [vmem:[%s1871_s0 + $0x310] sm:$0xff]  ;;  %v1175_v33 = vsub.f32 %v106_v24, %v234_v51  ;;  %v1177_v34 = vsub.f32 %v107_v25, %v235_v52  ;;  %v1179_v35 = vsub.f32 %v108_v26, %v236_v53 }
  0x2a   :  { %v123_v11 = vld [vmem:[%s1871_s0 + $0x318] sm:$0xff]  ;;  %v237_v5 = vld [vmem:[%s1872_s1 + $0x2a8] sm:$0xff]  ;;  %v238_v6 = vld [vmem:[%s1872_s1 + $0x2b0] sm:$0xff] }
  0x2b   :  { %v239_v7 = vld [vmem:[%s1872_s1 + $0x2b8] sm:$0xff]  ;;  %1891 = vst [vmem:[#allocation19_spill] sm:$0xff] %v1175_v33  ;;  %1892 = vst [vmem:[#allocation20_spill] sm:$0xff] %v1177_v34  ;;  %v124_v23 = vld [vmem:[%s1871_s0 + $0x320] sm:$0xff]  ;;  %v1199_v51 = vsub.f32 %v109_v48, %v237_v5  ;;  %v1201_v52 = vsub.f32 %v110_v49, %v238_v6 }
  0x2c   :  { %1893 = vst [vmem:[#allocation21_spill] sm:$0xff] %v1179_v35  ;;  %v125_v22 = vld [vmem:[%s1871_s0 + $0x328] sm:$0xff]  ;;  %v126_v21 = vld [vmem:[%s1871_s0 + $0x330] sm:$0xff]  ;;  %v240_v24 = vld [vmem:[%s1872_s1 + $0x2c0] sm:$0xff]  ;;  %v1203_v53 = vsub.f32 %v111_v50, %v239_v7 }
  0x2d   :  { %v241_v25 = vld [vmem:[%s1872_s1 + $0x2c8] sm:$0xff]  ;;  %v242_v26 = vld [vmem:[%s1872_s1 + $0x2d0] sm:$0xff]  ;;  %1894 = vst [vmem:[#allocation22_spill] sm:$0xff] %v1199_v51  ;;  %1895 = vst [vmem:[#allocation23_spill] sm:$0xff] %v1201_v52  ;;  %v1223_v5 = vsub.f32 %v112_v41, %v240_v24 }
  0x2e   :  { %1896 = vst [vmem:[#allocation24_spill] sm:$0xff] %v1203_v53  ;;  %v127_v35 = vld [vmem:[%s1871_s0 + $0x338] sm:$0xff]  ;;  %v128_v34 = vld [vmem:[%s1871_s0 + $0x340] sm:$0xff]  ;;  %v129_v33 = vld [vmem:[%s1871_s0 + $0x348] sm:$0xff]  ;;  %v1225_v6 = vsub.f32 %v113_v40, %v241_v25  ;;  %v1227_v7 = vsub.f32 %v114_v39, %v242_v26 }
  0x2f   :  { %v243_v48 = vld [vmem:[%s1872_s1 + $0x2d8] sm:$0xff]  ;;  %v244_v49 = vld [vmem:[%s1872_s1 + $0x2e0] sm:$0xff]  ;;  %v245_v50 = vld [vmem:[%s1872_s1 + $0x2e8] sm:$0xff]  ;;  %1897 = vst [vmem:[#allocation25_spill] sm:$0xff] %v1223_v5 }
  0x30   :  { %1898 = vst [vmem:[#allocation26_spill] sm:$0xff] %v1225_v6  ;;  %1899 = vst [vmem:[#allocation27_spill] sm:$0xff] %v1227_v7  ;;  %v130_v53 = vld [vmem:[%s1871_s0 + $0x350] sm:$0xff]  ;;  %v131_v52 = vld [vmem:[%s1871_s0 + $0x358] sm:$0xff]  ;;  %v1247_v24 = vsub.f32 %v115_v59, %v243_v48  ;;  %v1249_v25 = vsub.f32 %v116_v58, %v244_v49  ;;  %v1251_v26 = vsub.f32 %v117_v57, %v245_v50 }
  0x31   :  { %v132_v51 = vld [vmem:[%s1871_s0 + $0x360] sm:$0xff]  ;;  %v246_v41 = vld [vmem:[%s1872_s1 + $0x2f0] sm:$0xff]  ;;  %v247_v39 = vld [vmem:[%s1872_s1 + $0x2f8] sm:$0xff] }
  0x32   :  { %v248_v40 = vld [vmem:[%s1872_s1 + $0x300] sm:$0xff]  ;;  %1900 = vst [vmem:[#allocation28_spill] sm:$0xff] %v1247_v24  ;;  %1901 = vst [vmem:[#allocation29_spill] sm:$0xff] %v1249_v25  ;;  %v133_v7 = vld [vmem:[%s1871_s0 + $0x368] sm:$0xff]  ;;  %v1271_v48 = vsub.f32 %v118_v4, %v246_v41  ;;  %v1273_v49 = vsub.f32 %v119_v3, %v247_v39 }
  0x33   :  { %1902 = vst [vmem:[#allocation30_spill] sm:$0xff] %v1251_v26  ;;  %v134_v6 = vld [vmem:[%s1871_s0 + $0x370] sm:$0xff]  ;;  %v135_v5 = vld [vmem:[%s1871_s0 + $0x378] sm:$0xff]  ;;  %v249_v59 = vld [vmem:[%s1872_s1 + $0x308] sm:$0xff]  ;;  %v1275_v50 = vsub.f32 %v120_v2, %v248_v40 }
  0x34   :  { %v250_v57 = vld [vmem:[%s1872_s1 + $0x310] sm:$0xff]  ;;  %v251_v58 = vld [vmem:[%s1872_s1 + $0x318] sm:$0xff]  ;;  %1903 = vst [vmem:[#allocation31_spill] sm:$0xff] %v1271_v48  ;;  %1904 = vst [vmem:[#allocation32_spill] sm:$0xff] %v1273_v49  ;;  %v1295_v41 = vsub.f32 %v121_v13, %v249_v59 }
  0x35   :  { %1905 = vst [vmem:[#allocation33_spill] sm:$0xff] %v1275_v50  ;;  %v136_v26 = vld [vmem:[%s1871_s0 + $0x380] sm:$0xff]  ;;  %v137_v25 = vld [vmem:[%s1871_s0 + $0x388] sm:$0xff]  ;;  %v138_v24 = vld [vmem:[%s1871_s0 + $0x390] sm:$0xff]  ;;  %v1297_v39 = vsub.f32 %v122_v12, %v250_v57  ;;  %v1299_v40 = vsub.f32 %v123_v11, %v251_v58 }
  0x36   :  { %v252_v4 = vld [vmem:[%s1872_s1 + $0x320] sm:$0xff]  ;;  %v253_v2 = vld [vmem:[%s1872_s1 + $0x328] sm:$0xff]  ;;  %v254_v3 = vld [vmem:[%s1872_s1 + $0x330] sm:$0xff]  ;;  %1906 = vst [vmem:[#allocation34_spill] sm:$0xff] %v1295_v41 }
  0x37   :  { %1907 = vst [vmem:[#allocation35_spill] sm:$0xff] %v1297_v39  ;;  %1908 = vst [vmem:[#allocation36_spill] sm:$0xff] %v1299_v40  ;;  %v139_v50 = vld [vmem:[%s1871_s0 + $0x398] sm:$0xff]  ;;  %v140_v49 = vld [vmem:[%s1871_s0 + $0x3a0] sm:$0xff]  ;;  %v1319_v59 = vsub.f32 %v124_v23, %v252_v4  ;;  %v1321_v57 = vsub.f32 %v125_v22, %v253_v2  ;;  %v1323_v58 = vsub.f32 %v126_v21, %v254_v3 }
  0x38   :  { %v141_v48 = vld [vmem:[%s1871_s0 + $0x3a8] sm:$0xff]  ;;  %v255_v13 = vld [vmem:[%s1872_s1 + $0x338] sm:$0xff]  ;;  %v256_v11 = vld [vmem:[%s1872_s1 + $0x340] sm:$0xff] }
  0x39   :  { %v257_v12 = vld [vmem:[%s1872_s1 + $0x348] sm:$0xff]  ;;  %1909 = vst [vmem:[#allocation37_spill] sm:$0xff] %v1319_v59  ;;  %1910 = vst [vmem:[#allocation38_spill] sm:$0xff] %v1321_v57  ;;  %v142_v40 = vld [vmem:[%s1871_s0 + $0x3b0] sm:$0xff]  ;;  %v1343_v4 = vsub.f32 %v127_v35, %v255_v13  ;;  %v1345_v2 = vsub.f32 %v128_v34, %v256_v11 }
  0x3a   :  { %1911 = vst [vmem:[#allocation39_spill] sm:$0xff] %v1323_v58  ;;  %v143_v39 = vld [vmem:[%s1871_s0 + $0x3b8] sm:$0xff]  ;;  %v144_v41 = vld [vmem:[%s1871_s0 + $0x3c0] sm:$0xff]  ;;  %v258_v23 = vld [vmem:[%s1872_s1 + $0x350] sm:$0xff]  ;;  %v1347_v3 = vsub.f32 %v129_v33, %v257_v12 }
  0x3b   :  { %v259_v21 = vld [vmem:[%s1872_s1 + $0x358] sm:$0xff]  ;;  %v260_v22 = vld [vmem:[%s1872_s1 + $0x360] sm:$0xff]  ;;  %1912 = vst [vmem:[#allocation40_spill] sm:$0xff] %v1343_v4  ;;  %1913 = vst [vmem:[#allocation41_spill] sm:$0xff] %v1345_v2  ;;  %v1367_v13 = vsub.f32 %v130_v53, %v258_v23 }
  0x3c   :  { %1914 = vst [vmem:[#allocation42_spill] sm:$0xff] %v1347_v3  ;;  %v145_v58 = vld [vmem:[%s1871_s0 + $0x3c8] sm:$0xff]  ;;  %v146_v57 = vld [vmem:[%s1871_s0 + $0x3d0] sm:$0xff]  ;;  %v147_v59 = vld [vmem:[%s1871_s0 + $0x3d8] sm:$0xff]  ;;  %v1369_v11 = vsub.f32 %v131_v52, %v259_v21  ;;  %v1371_v12 = vsub.f32 %v132_v51, %v260_v22 }
  0x3d   :  { %v261_v35 = vld [vmem:[%s1872_s1 + $0x368] sm:$0xff]  ;;  %v262_v33 = vld [vmem:[%s1872_s1 + $0x370] sm:$0xff]  ;;  %v263_v34 = vld [vmem:[%s1872_s1 + $0x378] sm:$0xff]  ;;  %1915 = vst [vmem:[#allocation43_spill] sm:$0xff] %v1367_v13 }
  0x3e   :  { %1916 = vst [vmem:[#allocation44_spill] sm:$0xff] %v1369_v11  ;;  %1917 = vst [vmem:[#allocation45_spill] sm:$0xff] %v1371_v12  ;;  %v148_v3 = vld [vmem:[%s1871_s0 + $0x3e0] sm:$0xff]  ;;  %v149_v2 = vld [vmem:[%s1871_s0 + $0x3e8] sm:$0xff]  ;;  %v1391_v23 = vsub.f32 %v133_v7, %v261_v35  ;;  %v1393_v21 = vsub.f32 %v134_v6, %v262_v33  ;;  %v1395_v22 = vsub.f32 %v135_v5, %v263_v34 }
  0x3f   :  { %v150_v4 = vld [vmem:[%s1871_s0 + $0x3f0] sm:$0xff]  ;;  %v264_v53 = vld [vmem:[%s1872_s1 + $0x380] sm:$0xff]  ;;  %v265_v51 = vld [vmem:[%s1872_s1 + $0x388] sm:$0xff] }
  0x40   :  { %v266_v52 = vld [vmem:[%s1872_s1 + $0x390] sm:$0xff]  ;;  %1918 = vst [vmem:[#allocation46_spill] sm:$0xff] %v1393_v21  ;;  %1919 = vst [vmem:[#allocation47_spill] sm:$0xff] %v1395_v22  ;;  %v151_v12 = vld [vmem:[%s1871_s0 + $0x3f8] sm:$0xff]  ;;  %v1409_v6 = vsub.f32 %v136_v26, %v264_v53  ;;  %v1411_v5 = vsub.f32 %v137_v25, %v265_v51 }
  0x41   :  { %v267_v11 = vld [vmem:[%s1872_s1 + $0x398] sm:$0xff]  ;;  %v268_v13 = vld [vmem:[%s1872_s1 + $0x3a0] sm:$0xff]  ;;  %v269_v7 = vld [vmem:[%s1872_s1 + $0x3a8] sm:$0xff]  ;;  %v1413_v35 = vsub.f32 %v138_v24, %v266_v52 }
  0x42   :  { %v270_v33 = vld [vmem:[%s1872_s1 + $0x3b0] sm:$0xff]  ;;  %v271_v34 = vld [vmem:[%s1872_s1 + $0x3b8] sm:$0xff]  ;;  %v272_v22 = vld [vmem:[%s1872_s1 + $0x3c0] sm:$0xff]  ;;  %v1424_v21 = vsub.f32 %v139_v50, %v267_v11  ;;  %v1426_v26 = vsub.f32 %v140_v49, %v268_v13  ;;  %v1428_v25 = vsub.f32 %v141_v48, %v269_v7 }
  0x43   :  { %v273_v24 = vld [vmem:[%s1872_s1 + $0x3c8] sm:$0xff]  ;;  %v274_v53 = vld [vmem:[%s1872_s1 + $0x3d0] sm:$0xff]  ;;  %v275_v51 = vld [vmem:[%s1872_s1 + $0x3d8] sm:$0xff]  ;;  %v1439_v52 = vsub.f32 %v142_v40, %v270_v33  ;;  %v1441_v50 = vsub.f32 %v143_v39, %v271_v34  ;;  %v1443_v49 = vsub.f32 %v144_v41, %v272_v22 }
  0x44   :  { %v276_v48 = vld [vmem:[%s1872_s1 + $0x3e0] sm:$0xff]  ;;  %v277_v13 = vld [vmem:[%s1872_s1 + $0x3e8] sm:$0xff]  ;;  %v278_v11 = vld [vmem:[%s1872_s1 + $0x3f0] sm:$0xff]  ;;  %v1454_v7 = vsub.f32 %v145_v58, %v273_v24  ;;  %v1456_v40 = vsub.f32 %v146_v57, %v274_v53  ;;  %v1458_v39 = vsub.f32 %v147_v59, %v275_v51 }
  0x45   :  { %1920 = vst [vmem:[#allocation48_spill] sm:$0xff] %v1439_v52  ;;  %1921 = vst [vmem:[#allocation49_spill] sm:$0xff] %v1441_v50  ;;  %v279_v41 = vld [vmem:[%s1872_s1 + $0x3f8] sm:$0xff]  ;;  %v1463_v22 = vsub.f32 %v148_v3, %v276_v48  ;;  %v1465_v33 = vsub.f32 %v149_v2, %v277_v13  ;;  %v1467_v34 = vsub.f32 %v150_v4, %v278_v11  ;;  %v24_v58 = vld [vmem:[%s1871_s0] sm:$0xff] }
  0x46   :  { %1922 = vst [vmem:[#allocation50_spill] sm:$0xff] %v1443_v49  ;;  %1923 = vst [vmem:[#allocation51_spill] sm:$0xff] %v1454_v7  ;;  %v1469_v49 = vsub.f32 %v151_v12, %v279_v41  ;;  %v25_v59 = vld [vmem:[%s1871_s0 + $0x8] sm:$0xff]  ;;  %v152_v57 = vld [vmem:[%s1872_s1] sm:$0xff] }
  0x47   :  { %1924 = vst [vmem:[#allocation52_spill] sm:$0xff] %v1456_v40  ;;  %1925 = vst [vmem:[#allocation53_spill] sm:$0xff] %v1458_v39  ;;  %v153_v2 = vld [vmem:[%s1872_s1 + $0x8] sm:$0xff]  ;;  %v26_v4 = vld [vmem:[%s1871_s0 + $0x10] sm:$0xff]  ;;  %v280_v12 = vsub.f32 %v24_v58, %v152_v57 }
  0x48   :  { %1926 = vst [vmem:[#allocation54_spill] sm:$0xff] %v1463_v22  ;;  %1927 = vst [vmem:[#allocation55_spill] sm:$0xff] %v1465_v33  ;;  %v154_v3 = vld [vmem:[%s1872_s1 + $0x10] sm:$0xff]  ;;  %v281_v24 = vsub.f32 %v25_v59, %v153_v2  ;;  %v27_v53 = vld [vmem:[%s1871_s0 + $0x18] sm:$0xff] }
  0x49   :  { %1928 = vst [vmem:[#allocation56_spill] sm:$0xff] %v1467_v34  ;;  %1929 = vst [vmem:[#allocation57_spill] sm:$0xff] %v1469_v49  ;;  %v155_v51 = vld [vmem:[%s1872_s1 + $0x18] sm:$0xff]  ;;  %v282_v48 = vsub.f32 %v26_v4, %v154_v3  ;;  %v28_v13 = vld [vmem:[%s1871_s0 + $0x20] sm:$0xff]  ;;  %v408_v58 = vmul.f32 %v280_v12, %v280_v12 }
  0x4a   :  { %v156_v11 = vld [vmem:[%s1872_s1 + $0x20] sm:$0xff]  ;;  %v283_v41 = vsub.f32 %v27_v53, %v155_v51  ;;  %v409_v59 = vmul.f32 %v281_v24, %v281_v24  ;;  %v29_v57 = vld [vmem:[%s1871_s0 + $0x28] sm:$0xff]  ;;  %v30_v49 = vld [vmem:[%s1871_s0 + $0x30] sm:$0xff] }
  0x4b   :  { %v157_v2 = vld [vmem:[%s1872_s1 + $0x28] sm:$0xff]  ;;  %v284_v4 = vsub.f32 %v28_v13, %v156_v11  ;;  %v410_v3 = vmul.f32 %v282_v48, %v282_v48  ;;  %v158_v53 = vld [vmem:[%s1872_s1 + $0x30] sm:$0xff]  ;;  %v31_v34 = vld [vmem:[%s1871_s0 + $0x38] sm:$0xff] }
  0x4c   :  { %v285_v12 = vsub.f32 %v29_v57, %v157_v2  ;;  %v411_v24 = vmul.f32 %v283_v41, %v283_v41  ;;  %v536_v51 = vadd.f32 %v409_v59, %v408_v58  ;;  %v159_v13 = vld [vmem:[%s1872_s1 + $0x38] sm:$0xff]  ;;  %v286_v48 = vsub.f32 %v30_v49, %v158_v53  ;;  %v32_v22 = vld [vmem:[%s1871_s0 + $0x40] sm:$0xff]  ;;  %v33_v2 = vld [vmem:[%s1871_s0 + $0x48] sm:$0xff] }
  0x4d   :  { %v412_v11 = vmul.f32 %v284_v4, %v284_v4  ;;  %v160_v41 = vld [vmem:[%s1872_s1 + $0x40] sm:$0xff]  ;;  %v287_v58 = vsub.f32 %v31_v34, %v159_v13  ;;  %v161_v49 = vld [vmem:[%s1872_s1 + $0x48] sm:$0xff]  ;;  %v162_v34 = vld [vmem:[%s1872_s1 + $0x50] sm:$0xff] }
  0x4e   :  { %v537_v33 = vadd.f32 %v536_v51, %v410_v3  ;;  %v413_v59 = vmul.f32 %v285_v12, %v285_v12  ;;  %v288_v4 = vsub.f32 %v32_v22, %v160_v41  ;;  %v414_v3 = vmul.f32 %v286_v48, %v286_v48  ;;  %v34_v51 = vld [vmem:[%s1871_s0 + $0x50] sm:$0xff]  ;;  %v35_v13 = vld [vmem:[%s1871_s0 + $0x58] sm:$0xff] }
  0x4f   :  { %v415_v12 = vmul.f32 %v287_v58, %v287_v58  ;;  %v163_v22 = vld [vmem:[%s1872_s1 + $0x58] sm:$0xff]  ;;  %v290_v48 = vsub.f32 %v34_v51, %v162_v34  ;;  %v164_v58 = vld [vmem:[%s1872_s1 + $0x60] sm:$0xff] }
  0x50   :  { %v538_v57 = vadd.f32 %v537_v33, %v411_v24  ;;  %v289_v33 = vsub.f32 %v33_v2, %v161_v49 }
  0x51   :  { %v418_v51 = vmul.f32 %v290_v48, %v290_v48  ;;  %v167_v48 = vld [vmem:[%s1872_s1 + $0x78] sm:$0xff] }
  0x52   :  { %v539_v53 = vadd.f32 %v538_v57, %v412_v11  ;;  %v416_v11 = vmul.f32 %v288_v4, %v288_v4  ;;  %v36_v57 = vld [vmem:[%s1871_s0 + $0x60] sm:$0xff]  ;;  %v417_v2 = vmul.f32 %v289_v33, %v289_v33  ;;  %v165_v4 = vld [vmem:[%s1872_s1 + $0x68] sm:$0xff]  ;;  %v166_v33 = vld [vmem:[%s1872_s1 + $0x70] sm:$0xff] }
  0x54   :  { %v540_v24 = vadd.f32 %v539_v53, %v413_v59  ;;  %v291_v59 = vsub.f32 %v35_v13, %v163_v22  ;;  %v37_v53 = vld [vmem:[%s1871_s0 + $0x68] sm:$0xff] }
  0x56   :  { %v541_v41 = vadd.f32 %v540_v24, %v414_v3  ;;  %v292_v3 = vsub.f32 %v36_v57, %v164_v58  ;;  %v38_v24 = vld [vmem:[%s1871_s0 + $0x70] sm:$0xff]  ;;  %v419_v13 = vmul.f32 %v291_v59, %v291_v59  ;;  %v168_v59 = vld [vmem:[%s1872_s1 + $0x80] sm:$0xff] }
  0x58   :  { %v542_v49 = vadd.f32 %v541_v41, %v415_v12  ;;  %v293_v12 = vsub.f32 %v37_v53, %v165_v4  ;;  %v39_v41 = vld [vmem:[%s1871_s0 + $0x78] sm:$0xff]  ;;  %v420_v57 = vmul.f32 %v292_v3, %v292_v3  ;;  %v169_v3 = vld [vmem:[%s1872_s1 + $0x88] sm:$0xff] }
  0x5a   :  { %v543_v34 = vadd.f32 %v542_v49, %v416_v11  ;;  %v294_v11 = vsub.f32 %v38_v24, %v166_v33  ;;  %v40_v49 = vld [vmem:[%s1871_s0 + $0x80] sm:$0xff]  ;;  %v421_v53 = vmul.f32 %v293_v12, %v293_v12  ;;  %v170_v12 = vld [vmem:[%s1872_s1 + $0x90] sm:$0xff] }
  0x5c   :  { %v544_v22 = vadd.f32 %v543_v34, %v417_v2  ;;  %v295_v2 = vsub.f32 %v39_v41, %v167_v48  ;;  %v41_v34 = vld [vmem:[%s1871_s0 + $0x88] sm:$0xff]  ;;  %v422_v24 = vmul.f32 %v294_v11, %v294_v11  ;;  %v171_v11 = vld [vmem:[%s1872_s1 + $0x98] sm:$0xff] }
  0x5e   :  { %v545_v58 = vadd.f32 %v544_v22, %v418_v51  ;;  %v296_v51 = vsub.f32 %v40_v49, %v168_v59  ;;  %v42_v22 = vld [vmem:[%s1871_s0 + $0x90] sm:$0xff]  ;;  %v423_v41 = vmul.f32 %v295_v2, %v295_v2  ;;  %v172_v2 = vld [vmem:[%s1872_s1 + $0xa0] sm:$0xff] }
  0x60   :  { %v546_v4 = vadd.f32 %v545_v58, %v419_v13  ;;  %v297_v13 = vsub.f32 %v41_v34, %v169_v3  ;;  %v43_v58 = vld [vmem:[%s1871_s0 + $0x98] sm:$0xff]  ;;  %v424_v49 = vmul.f32 %v296_v51, %v296_v51  ;;  %v173_v51 = vld [vmem:[%s1872_s1 + $0xa8] sm:$0xff] }
  0x62   :  { %v547_v33 = vadd.f32 %v546_v4, %v420_v57  ;;  %v298_v57 = vsub.f32 %v42_v22, %v170_v12  ;;  %v44_v4 = vld [vmem:[%s1871_s0 + $0xa0] sm:$0xff]  ;;  %v425_v34 = vmul.f32 %v297_v13, %v297_v13  ;;  %v174_v13 = vld [vmem:[%s1872_s1 + $0xb0] sm:$0xff] }
  0x64   :  { %v548_v48 = vadd.f32 %v547_v33, %v421_v53  ;;  %v299_v53 = vsub.f32 %v43_v58, %v171_v11  ;;  %v45_v33 = vld [vmem:[%s1871_s0 + $0xa8] sm:$0xff]  ;;  %v426_v22 = vmul.f32 %v298_v57, %v298_v57  ;;  %v175_v57 = vld [vmem:[%s1872_s1 + $0xb8] sm:$0xff] }
  0x66   :  { %v549_v59 = vadd.f32 %v548_v48, %v422_v24  ;;  %v300_v24 = vsub.f32 %v44_v4, %v172_v2  ;;  %v46_v48 = vld [vmem:[%s1871_s0 + $0xb0] sm:$0xff]  ;;  %v427_v58 = vmul.f32 %v299_v53, %v299_v53  ;;  %v176_v53 = vld [vmem:[%s1872_s1 + $0xc0] sm:$0xff] }
  0x68   :  { %v550_v3 = vadd.f32 %v549_v59, %v423_v41  ;;  %v301_v41 = vsub.f32 %v45_v33, %v173_v51  ;;  %v47_v59 = vld [vmem:[%s1871_s0 + $0xb8] sm:$0xff]  ;;  %v428_v4 = vmul.f32 %v300_v24, %v300_v24  ;;  %v177_v24 = vld [vmem:[%s1872_s1 + $0xc8] sm:$0xff] }
  0x6a   :  { %v551_v12 = vadd.f32 %v550_v3, %v424_v49  ;;  %v302_v49 = vsub.f32 %v46_v48, %v174_v13  ;;  %v48_v3 = vld [vmem:[%s1871_s0 + $0xc0] sm:$0xff]  ;;  %v429_v33 = vmul.f32 %v301_v41, %v301_v41  ;;  %v178_v41 = vld [vmem:[%s1872_s1 + $0xd0] sm:$0xff] }
  0x6c   :  { %v552_v11 = vadd.f32 %v551_v12, %v425_v34  ;;  %v303_v34 = vsub.f32 %v47_v59, %v175_v57  ;;  %v49_v12 = vld [vmem:[%s1871_s0 + $0xc8] sm:$0xff]  ;;  %v430_v48 = vmul.f32 %v302_v49, %v302_v49  ;;  %v179_v49 = vld [vmem:[%s1872_s1 + $0xd8] sm:$0xff] }
  0x6e   :  { %v553_v2 = vadd.f32 %v552_v11, %v426_v22  ;;  %v304_v22 = vsub.f32 %v48_v3, %v176_v53  ;;  %v50_v11 = vld [vmem:[%s1871_s0 + $0xd0] sm:$0xff]  ;;  %v431_v59 = vmul.f32 %v303_v34, %v303_v34  ;;  %v180_v34 = vld [vmem:[%s1872_s1 + $0xe0] sm:$0xff] }
  0x70   :  { %v554_v51 = vadd.f32 %v553_v2, %v427_v58  ;;  %v305_v58 = vsub.f32 %v49_v12, %v177_v24  ;;  %v51_v2 = vld [vmem:[%s1871_s0 + $0xd8] sm:$0xff]  ;;  %v432_v3 = vmul.f32 %v304_v22, %v304_v22  ;;  %v181_v22 = vld [vmem:[%s1872_s1 + $0xe8] sm:$0xff] }
  0x72   :  { %v555_v13 = vadd.f32 %v554_v51, %v428_v4  ;;  %v306_v4 = vsub.f32 %v50_v11, %v178_v41  ;;  %v52_v51 = vld [vmem:[%s1871_s0 + $0xe0] sm:$0xff]  ;;  %v433_v12 = vmul.f32 %v305_v58, %v305_v58  ;;  %v182_v58 = vld [vmem:[%s1872_s1 + $0xf0] sm:$0xff] }
  0x74   :  { %v556_v57 = vadd.f32 %v555_v13, %v429_v33  ;;  %v307_v33 = vsub.f32 %v51_v2, %v179_v49  ;;  %v53_v13 = vld [vmem:[%s1871_s0 + $0xe8] sm:$0xff]  ;;  %v434_v11 = vmul.f32 %v306_v4, %v306_v4  ;;  %v183_v4 = vld [vmem:[%s1872_s1 + $0xf8] sm:$0xff] }
  0x76   :  { %v557_v53 = vadd.f32 %v556_v57, %v430_v48  ;;  %v308_v48 = vsub.f32 %v52_v51, %v180_v34  ;;  %v54_v57 = vld [vmem:[%s1871_s0 + $0xf0] sm:$0xff]  ;;  %v435_v2 = vmul.f32 %v307_v33, %v307_v33  ;;  %v184_v33 = vld [vmem:[%s1872_s1 + $0x100] sm:$0xff] }
  0x78   :  { %v558_v24 = vadd.f32 %v557_v53, %v431_v59  ;;  %v309_v59 = vsub.f32 %v53_v13, %v181_v22  ;;  %v55_v53 = vld [vmem:[%s1871_s0 + $0xf8] sm:$0xff]  ;;  %v436_v51 = vmul.f32 %v308_v48, %v308_v48  ;;  %v441_v48 = vmul.f32 %v771_v20, %v771_v20 }
  0x79   :  { %v446_v20 = vmul.f32 %v817_v37, %v817_v37  ;;  %v451_v37 = vmul.f32 %v863_v54, %v863_v54  ;;  %v456_v54 = vmul.f32 %v891_v1, %v891_v1  ;;  %v461_v1 = vmul.f32 %v937_v18, %v937_v18 }
  0x7a   :  { %v559_v41 = vadd.f32 %v558_v24, %v432_v3  ;;  %v310_v3 = vsub.f32 %v54_v57, %v182_v58  ;;  %v56_v24 = vld [vmem:[%s1871_s0 + $0x100] sm:$0xff]  ;;  %v437_v13 = vmul.f32 %v309_v59, %v309_v59  ;;  %v442_v58 = vmul.f32 %v791_v27, %v791_v27 }
  0x7b   :  { %v447_v27 = vmul.f32 %v819_v38, %v819_v38  ;;  %v452_v38 = vmul.f32 %v865_v55, %v865_v55  ;;  %v457_v55 = vmul.f32 %v911_v8, %v911_v8  ;;  %v462_v8 = vmul.f32 %v939_v19, %v939_v19 }
  0x7c   :  { %v560_v49 = vadd.f32 %v559_v41, %v433_v12  ;;  %v311_v12 = vsub.f32 %v55_v53, %v183_v4  ;;  %v312_v41 = vsub.f32 %v56_v24, %v184_v33  ;;  %v438_v39 = vmul.f32 %v310_v3, %v310_v3 }
  0x7d   :  { %v443_v53 = vmul.f32 %v793_v28, %v793_v28  ;;  %v448_v28 = vmul.f32 %v839_v45, %v839_v45  ;;  %v453_v45 = vmul.f32 %v867_v56, %v867_v56  ;;  %v458_v56 = vmul.f32 %v913_v9, %v913_v9 }
  0x7e   :  { %v561_v34 = vadd.f32 %v560_v49, %v434_v11  ;;  %v439_v7 = vmul.f32 %v311_v12, %v311_v12  ;;  %v440_v52 = vmul.f32 %v312_v41, %v312_v41  ;;  %v463_v9 = vmul.f32 %v959_v30, %v959_v30 }
  0x7f   :  { %v466_v18 = vmul.f32 %v983_v42, %v983_v42  ;;  %v467_v19 = vmul.f32 %v985_v43, %v985_v43  ;;  %v468_v30 = vmul.f32 %v987_v44, %v987_v44  ;;  %v471_v42 = vmul.f32 %v1011_v62, %v1011_v62  ;;  %v666_v43 = vld [vmem:[%s1873_s2] sm:$0xff] }
  0x80   :  { %v562_v22 = vadd.f32 %v561_v34, %v435_v2  ;;  %v444_v2 = vmul.f32 %v795_v29, %v795_v29  ;;  %v449_v29 = vmul.f32 %v841_v46, %v841_v46  ;;  %v454_v46 = vmul.f32 %v887_v63, %v887_v63  ;;  %v667_v44 = vld [vmem:[%s1874_s3] sm:$0xff] }
  0x81   :  { %v459_v63 = vmul.f32 %v915_v10, %v915_v10  ;;  %v464_v10 = vmul.f32 %v961_v31, %v961_v31  ;;  %v469_v31 = vmul.f32 %v1007_v60, %v1007_v60  ;;  %v472_v60 = vmul.f32 %v1031_v14, %v1031_v14  ;;  %v1931_v14 = vld [vmem:[#allocation5_spill] sm:$0xff] }
  0x82   :  { %v563_v40 = vadd.f32 %v562_v22, %v436_v51  ;;  %v474_v62 = vmul.f32 %v1035_v16, %v1035_v16 }
  0x84   :  { %v564_v50 = vadd.f32 %v563_v40, %v437_v13  ;;  %v445_v40 = vmul.f32 %v815_v36, %v815_v36  ;;  %v450_v36 = vmul.f32 %v843_v47, %v843_v47  ;;  %v455_v47 = vmul.f32 %v889_v0, %v889_v0 }
  0x85   :  { %v460_v0 = vmul.f32 %v935_v17, %v935_v17  ;;  %v465_v17 = vmul.f32 %v963_v32, %v963_v32  ;;  %v470_v32 = vmul.f32 %v1009_v61, %v1009_v61  ;;  %v473_v61 = vmul.f32 %v1033_v15, %v1033_v15 }
  0x86   :  { %v565_v57 = vadd.f32 %v564_v50, %v438_v39 }
  0x88   :  { %v566_v11 = vadd.f32 %v565_v57, %v439_v7 }
  0x8a   :  { %v567_v49 = vadd.f32 %v566_v11, %v440_v52 }
  0x8c   :  { %v568_v59 = vadd.f32 %v567_v49, %v441_v48 }
  0x8e   :  { %v569_v4 = vadd.f32 %v568_v59, %v442_v58 }
  0x90   :  { %v570_v50 = vadd.f32 %v569_v4, %v443_v53 }
  0x92   :  { %v571_v7 = vadd.f32 %v570_v50, %v444_v2 }
  0x94   :  { %v572_v52 = vadd.f32 %v571_v7, %v445_v40 }
  0x96   :  { %v573_v39 = vadd.f32 %v572_v52, %v446_v20 }
  0x98   :  { %v574_v3 = vadd.f32 %v573_v39, %v447_v27 }
  0x9a   :  { %v575_v51 = vadd.f32 %v574_v3, %v448_v28  ;;  %v668_v28 = vsub.f32 %v666_v43, %v667_v44  ;;  %v1946_v44 = vld [vmem:[#allocation20_spill] sm:$0xff] }
  0x9c   :  { %v576_v34 = vadd.f32 %v575_v51, %v449_v29  ;;  %v669_v29 = vmul.f32 %v668_v28, %v668_v28  ;;  %v1947_v28 = vld [vmem:[#allocation21_spill] sm:$0xff] }
  0x9e   :  { %v577_v24 = vadd.f32 %v576_v34, %v450_v36  ;;  %685 = vst [vmem:[%s1875_s4 + $0x8] sm:$0xff] %v669_v29  ;;  %v1930_v36 = vld [vmem:[#allocation4_spill] sm:$0xff]  ;;  %v476_v34 = vmul.f32 %v1931_v14, %v1931_v14  ;;  %v1948_v29 = vld [vmem:[#allocation22_spill] sm:$0xff] }
  0x9f   :  { %v475_v51 = vmul.f32 %v1930_v36, %v1930_v36  ;;  %v1949_v36 = vld [vmem:[#allocation23_spill] sm:$0xff]  ;;  %v1950_v14 = vld [vmem:[#allocation24_spill] sm:$0xff] }
  0xa0   :  { %v578_v33 = vadd.f32 %v577_v24, %v451_v37  ;;  %v1932_v24 = vld [vmem:[#allocation6_spill] sm:$0xff] }
  0xa1   :  { %v477_v15 = vmul.f32 %v1932_v24, %v1932_v24  ;;  %v1951_v24 = vld [vmem:[#allocation25_spill] sm:$0xff] }
  0xa2   :  { %v579_v12 = vadd.f32 %v578_v33, %v452_v38  ;;  %v1933_v33 = vld [vmem:[#allocation7_spill] sm:$0xff] }
  0xa3   :  { %v478_v16 = vmul.f32 %v1933_v33, %v1933_v33  ;;  %v1952_v33 = vld [vmem:[#allocation26_spill] sm:$0xff] }
  0xa4   :  { %v580_v13 = vadd.f32 %v579_v12, %v453_v45  ;;  %v1934_v12 = vld [vmem:[#allocation8_spill] sm:$0xff] }
  0xa6   :  { %v581_v22 = vadd.f32 %v580_v13, %v454_v46 }
  0xa8   :  { %v582_v41 = vadd.f32 %v581_v22, %v455_v47  ;;  %v479_v47 = vmul.f32 %v1934_v12, %v1934_v12  ;;  %v1953_v12 = vld [vmem:[#allocation27_spill] sm:$0xff] }
  0xaa   :  { %v583_v57 = vadd.f32 %v582_v41, %v456_v54  ;;  %v1935_v54 = vld [vmem:[#allocation9_spill] sm:$0xff]  ;;  %v1936_v41 = vld [vmem:[#allocation10_spill] sm:$0xff] }
  0xab   :  { %v480_v22 = vmul.f32 %v1935_v54, %v1935_v54  ;;  %v1954_v54 = vld [vmem:[#allocation28_spill] sm:$0xff] }
  0xac   :  { %v584_v48 = vadd.f32 %v583_v57, %v457_v55 }
  0xae   :  { %v585_v11 = vadd.f32 %v584_v48, %v458_v56  ;;  %v481_v56 = vmul.f32 %v1936_v41, %v1936_v41  ;;  %v1955_v41 = vld [vmem:[#allocation29_spill] sm:$0xff] }
  0xb0   :  { %v586_v58 = vadd.f32 %v585_v11, %v459_v63  ;;  %v1937_v63 = vld [vmem:[#allocation11_spill] sm:$0xff]  ;;  %v1938_v11 = vld [vmem:[#allocation12_spill] sm:$0xff] }
  0xb1   :  { %v482_v48 = vmul.f32 %v1937_v63, %v1937_v63  ;;  %v1956_v63 = vld [vmem:[#allocation30_spill] sm:$0xff] }
  0xb2   :  { %v587_v49 = vadd.f32 %v586_v58, %v460_v0 }
  0xb4   :  { %v588_v53 = vadd.f32 %v587_v49, %v461_v1  ;;  %v483_v1 = vmul.f32 %v1938_v11, %v1938_v11  ;;  %v1957_v11 = vld [vmem:[#allocation31_spill] sm:$0xff] }
  0xb6   :  { %v589_v59 = vadd.f32 %v588_v53, %v462_v8  ;;  %v1939_v8 = vld [vmem:[#allocation13_spill] sm:$0xff]  ;;  %v1940_v53 = vld [vmem:[#allocation14_spill] sm:$0xff] }
  0xb7   :  { %v484_v49 = vmul.f32 %v1939_v8, %v1939_v8  ;;  %v1958_v8 = vld [vmem:[#allocation32_spill] sm:$0xff] }
  0xb8   :  { %v590_v2 = vadd.f32 %v589_v59, %v463_v9 }
  0xba   :  { %v591_v4 = vadd.f32 %v590_v2, %v464_v10  ;;  %v485_v10 = vmul.f32 %v1940_v53, %v1940_v53  ;;  %v1959_v53 = vld [vmem:[#allocation33_spill] sm:$0xff] }
  0xbc   :  { %v592_v40 = vadd.f32 %v591_v4, %v465_v17  ;;  %v1941_v17 = vld [vmem:[#allocation15_spill] sm:$0xff]  ;;  %v1942_v4 = vld [vmem:[#allocation16_spill] sm:$0xff] }
  0xbd   :  { %v486_v2 = vmul.f32 %v1941_v17, %v1941_v17  ;;  %v1960_v17 = vld [vmem:[#allocation34_spill] sm:$0xff] }
  0xbe   :  { %v593_v50 = vadd.f32 %v592_v40, %v466_v18 }
  0xc0   :  { %v594_v20 = vadd.f32 %v593_v50, %v467_v19  ;;  %v487_v19 = vmul.f32 %v1942_v4, %v1942_v4  ;;  %v1961_v4 = vld [vmem:[#allocation35_spill] sm:$0xff] }
  0xc2   :  { %v595_v7 = vadd.f32 %v594_v20, %v468_v30  ;;  %v1943_v30 = vld [vmem:[#allocation17_spill] sm:$0xff]  ;;  %v1944_v20 = vld [vmem:[#allocation18_spill] sm:$0xff] }
  0xc3   :  { %v488_v50 = vmul.f32 %v1943_v30, %v1943_v30  ;;  %v1962_v30 = vld [vmem:[#allocation36_spill] sm:$0xff] }
  0xc4   :  { %v596_v27 = vadd.f32 %v595_v7, %v469_v31 }
  0xc6   :  { %v597_v52 = vadd.f32 %v596_v27, %v470_v32  ;;  %v489_v32 = vmul.f32 %v1944_v20, %v1944_v20  ;;  %v1963_v20 = vld [vmem:[#allocation37_spill] sm:$0xff] }
  0xc8   :  { %v598_v39 = vadd.f32 %v597_v52, %v471_v42  ;;  %v1945_v42 = vld [vmem:[#allocation19_spill] sm:$0xff] }
  0xc9   :  { %v490_v27 = vmul.f32 %v1945_v42, %v1945_v42  ;;  %v1964_v42 = vld [vmem:[#allocation38_spill] sm:$0xff] }
  0xca   :  { %v599_v3 = vadd.f32 %v598_v39, %v472_v60  ;;  %v491_v60 = vmul.f32 %v1946_v44, %v1946_v44  ;;  %v1965_v44 = vld [vmem:[#allocation39_spill] sm:$0xff] }
  0xcc   :  { %v600_v37 = vadd.f32 %v599_v3, %v473_v61  ;;  %v492_v61 = vmul.f32 %v1947_v28, %v1947_v28  ;;  %v1966_v28 = vld [vmem:[#allocation40_spill] sm:$0xff] }
  0xce   :  { %v601_v38 = vadd.f32 %v600_v37, %v474_v62  ;;  %v493_v62 = vmul.f32 %v1948_v29, %v1948_v29  ;;  %v1967_v29 = vld [vmem:[#allocation41_spill] sm:$0xff] }
  0xd0   :  { %v602_v45 = vadd.f32 %v601_v38, %v475_v51  ;;  %v494_v51 = vmul.f32 %v1949_v36, %v1949_v36  ;;  %v1968_v36 = vld [vmem:[#allocation42_spill] sm:$0xff] }
  0xd2   :  { %v603_v46 = vadd.f32 %v602_v45, %v476_v34  ;;  %v495_v34 = vmul.f32 %v1950_v14, %v1950_v14  ;;  %v1969_v14 = vld [vmem:[#allocation43_spill] sm:$0xff] }
  0xd4   :  { %v604_v13 = vadd.f32 %v603_v46, %v477_v15  ;;  %v496_v15 = vmul.f32 %v1951_v24, %v1951_v24  ;;  %v1970_v24 = vld [vmem:[#allocation44_spill] sm:$0xff] }
  0xd6   :  { %v605_v55 = vadd.f32 %v604_v13, %v478_v16  ;;  %v497_v16 = vmul.f32 %v1952_v33, %v1952_v33  ;;  %v1971_v33 = vld [vmem:[#allocation45_spill] sm:$0xff] }
  0xd8   :  { %v606_v57 = vadd.f32 %v605_v55, %v479_v47  ;;  %v498_v47 = vmul.f32 %v1953_v12, %v1953_v12  ;;  %v517_v12 = vmul.f32 %v1391_v23, %v1391_v23  ;;  %v522_v23 = vmul.f32 %v1413_v35, %v1413_v35 }
  0xda   :  { %v607_v0 = vadd.f32 %v606_v57, %v480_v22  ;;  %v499_v22 = vmul.f32 %v1954_v54, %v1954_v54 }
  0xdc   :  { %v608_v58 = vadd.f32 %v607_v0, %v481_v56  ;;  %v500_v56 = vmul.f32 %v1955_v41, %v1955_v41 }
  0xde   :  { %v609_v9 = vadd.f32 %v608_v58, %v482_v48  ;;  %v501_v48 = vmul.f32 %v1956_v63, %v1956_v63 }
  0xe0   :  { %v610_v59 = vadd.f32 %v609_v9, %v483_v1  ;;  %v502_v1 = vmul.f32 %v1957_v11, %v1957_v11 }
  0xe2   :  { %v611_v18 = vadd.f32 %v610_v59, %v484_v49  ;;  %v503_v49 = vmul.f32 %v1958_v8, %v1958_v8  ;;  %v524_v8 = vmul.f32 %v1426_v26, %v1426_v26 }
  0xe4   :  { %v612_v40 = vadd.f32 %v611_v18, %v485_v10  ;;  %v504_v10 = vmul.f32 %v1959_v53, %v1959_v53  ;;  %v1974_v53 = vld [vmem:[#allocation48_spill] sm:$0xff] }
  0xe6   :  { %v613_v31 = vadd.f32 %v612_v40, %v486_v2  ;;  %v505_v2 = vmul.f32 %v1960_v17, %v1960_v17 }
  0xe8   :  { %v614_v7 = vadd.f32 %v613_v31, %v487_v19  ;;  %v506_v19 = vmul.f32 %v1961_v4, %v1961_v4  ;;  %v1977_v4 = vld [vmem:[#allocation51_spill] sm:$0xff] }
  0xe9   :  { %v529_v26 = vmul.f32 %v1977_v4, %v1977_v4 }
  0xea   :  { %v615_v43 = vadd.f32 %v614_v7, %v488_v50  ;;  %v507_v50 = vmul.f32 %v1962_v30, %v1962_v30 }
  0xec   :  { %v616_v52 = vadd.f32 %v615_v43, %v489_v32  ;;  %v508_v32 = vmul.f32 %v1963_v20, %v1963_v20 }
  0xee   :  { %v617_v39 = vadd.f32 %v616_v52, %v490_v27  ;;  %v509_v27 = vmul.f32 %v1964_v42, %v1964_v42 }
  0xf0   :  { %v618_v3 = vadd.f32 %v617_v39, %v491_v60  ;;  %v510_v60 = vmul.f32 %v1965_v44, %v1965_v44 }
  0xf2   :  { %v619_v37 = vadd.f32 %v618_v3, %v492_v61  ;;  %v511_v61 = vmul.f32 %v1966_v28, %v1966_v28 }
  0xf4   :  { %v620_v38 = vadd.f32 %v619_v37, %v493_v62  ;;  %v512_v62 = vmul.f32 %v1967_v29, %v1967_v29 }
  0xf6   :  { %v621_v45 = vadd.f32 %v620_v38, %v494_v51  ;;  %v513_v51 = vmul.f32 %v1968_v36, %v1968_v36 }
  0xf8   :  { %v622_v46 = vadd.f32 %v621_v45, %v495_v34  ;;  %v514_v34 = vmul.f32 %v1969_v14, %v1969_v14 }
  0xfa   :  { %v623_v13 = vadd.f32 %v622_v46, %v496_v15  ;;  %v515_v15 = vmul.f32 %v1970_v24, %v1970_v24 }
  0xfc   :  { %v624_v55 = vadd.f32 %v623_v13, %v497_v16  ;;  %v516_v16 = vmul.f32 %v1971_v33, %v1971_v33  ;;  %v1972_v13 = vld [vmem:[#allocation46_spill] sm:$0xff] }
  0xfd   :  { %v518_v54 = vmul.f32 %v1972_v13, %v1972_v13 }
  0xfe   :  { %v625_v57 = vadd.f32 %v624_v55, %v498_v47  ;;  %v1973_v55 = vld [vmem:[#allocation47_spill] sm:$0xff] }
  0xff   :  { %v519_v41 = vmul.f32 %v1973_v55, %v1973_v55 }
 0x100   :  { %v626_v0 = vadd.f32 %v625_v57, %v499_v22  ;;  %v520_v57 = vmul.f32 %v1409_v6, %v1409_v6  ;;  %v525_v6 = vmul.f32 %v1428_v25, %v1428_v25 }
 0x102   :  { %v627_v58 = vadd.f32 %v626_v0, %v500_v56 }
 0x104   :  { %v628_v9 = vadd.f32 %v627_v58, %v501_v48  ;;  %v521_v48 = vmul.f32 %v1411_v5, %v1411_v5  ;;  %v526_v5 = vmul.f32 %v1974_v53, %v1974_v53 }
 0x106   :  { %v629_v59 = vadd.f32 %v628_v9, %v502_v1  ;;  %v523_v1 = vmul.f32 %v1424_v21, %v1424_v21 }
 0x108   :  { %v630_v18 = vadd.f32 %v629_v59, %v503_v49  ;;  %v1975_v59 = vld [vmem:[#allocation49_spill] sm:$0xff] }
 0x109   :  { %v527_v35 = vmul.f32 %v1975_v59, %v1975_v59 }
 0x10a   :  { %v631_v40 = vadd.f32 %v630_v18, %v504_v10 }
 0x10c   :  { %v632_v31 = vadd.f32 %v631_v40, %v505_v2  ;;  %v1976_v2 = vld [vmem:[#allocation50_spill] sm:$0xff]  ;;  %v1978_v40 = vld [vmem:[#allocation52_spill] sm:$0xff] }
 0x10d   :  { %v528_v21 = vmul.f32 %v1976_v2, %v1976_v2  ;;  %v530_v25 = vmul.f32 %v1978_v40, %v1978_v40 }
 0x10e   :  { %v633_v7 = vadd.f32 %v632_v31, %v506_v19 }
 0x110   :  { %v634_v43 = vadd.f32 %v633_v7, %v507_v50  ;;  %v1979_v50 = vld [vmem:[#allocation53_spill] sm:$0xff] }
 0x111   :  { %v531_v31 = vmul.f32 %v1979_v50, %v1979_v50 }
 0x112   :  { %v635_v52 = vadd.f32 %v634_v43, %v508_v32  ;;  %v1980_v32 = vld [vmem:[#allocation54_spill] sm:$0xff] }
 0x113   :  { %v532_v7 = vmul.f32 %v1980_v32, %v1980_v32 }
 0x114   :  { %v636_v39 = vadd.f32 %v635_v52, %v509_v27  ;;  %v1981_v27 = vld [vmem:[#allocation55_spill] sm:$0xff] }
 0x115   :  { %v533_v43 = vmul.f32 %v1981_v27, %v1981_v27 }
 0x116   :  { %v637_v3 = vadd.f32 %v636_v39, %v510_v60  ;;  %v1982_v60 = vld [vmem:[#allocation56_spill] sm:$0xff] }
 0x117   :  { %v534_v52 = vmul.f32 %v1982_v60, %v1982_v60 }
 0x118   :  { %v638_v37 = vadd.f32 %v637_v3, %v511_v61  ;;  %v1983_v61 = vld [vmem:[#allocation57_spill] sm:$0xff] }
 0x119   :  { %v535_v39 = vmul.f32 %v1983_v61, %v1983_v61 }
 0x11a   :  { %v639_v38 = vadd.f32 %v638_v37, %v512_v62 }
 0x11c   :  { %v640_v45 = vadd.f32 %v639_v38, %v513_v51 }
 0x11e   :  { %v641_v46 = vadd.f32 %v640_v45, %v514_v34 }
 0x120   :  { %v642_v47 = vadd.f32 %v641_v46, %v515_v15 }
 0x122   :  { %v643_v22 = vadd.f32 %v642_v47, %v516_v16 }
 0x124   :  { %v644_v56 = vadd.f32 %v643_v22, %v517_v12 }
 0x126   :  { %v645_v63 = vadd.f32 %v644_v56, %v518_v54 }
 0x128   :  { %v646_v0 = vadd.f32 %v645_v63, %v519_v41 }
 0x12a   :  { %v647_v11 = vadd.f32 %v646_v0, %v520_v57 }
 0x12c   :  { %v648_v58 = vadd.f32 %v647_v11, %v521_v48 }
 0x12e   :  { %v649_v49 = vadd.f32 %v648_v58, %v522_v23 }
 0x130   :  { %v650_v9 = vadd.f32 %v649_v49, %v523_v1 }
 0x132   :  { %v651_v10 = vadd.f32 %v650_v9, %v524_v8 }
 0x134   :  { %v652_v17 = vadd.f32 %v651_v10, %v525_v6 }
 0x136   :  { %v653_v18 = vadd.f32 %v652_v17, %v526_v5 }
 0x138   :  { %v654_v19 = vadd.f32 %v653_v18, %v527_v35 }
 0x13a   :  { %v655_v30 = vadd.f32 %v654_v19, %v528_v21 }
 0x13c   :  { %v656_v20 = vadd.f32 %v655_v30, %v529_v26 }
 0x13e   :  { %v657_v42 = vadd.f32 %v656_v20, %v530_v25 }
 0x140   :  { %v658_v44 = vadd.f32 %v657_v42, %v531_v31 }
 0x142   :  { %v659_v28 = vadd.f32 %v658_v44, %v532_v7 }
 0x144   :  { %v660_v29 = vadd.f32 %v659_v28, %v533_v43 }
 0x146   :  { %v661_v62 = vadd.f32 %v660_v29, %v534_v52 }
 0x148   :  { %v662_v3 = vadd.f32 %v661_v62, %v535_v39 }
 0x14a   :  { %677 = vst [vmem:[%s1875_s4] sm:$0xff] %v662_v3 }

</bundles_post_ra>
